<compile_context>
chip_gen: v5e
topology: v5e:2x2
jax: 0.10.0
libtpu: 0.0.40
codegen_flags: <defaults>
</compile_context>

<pallas_src>
import functools

import jax
import jax.numpy as jnp
from jax.experimental import pallas as pl
from jax.experimental.pallas import tpu as pltpu

LANE = 128  # lane width of a vreg / lane-dense granularity


def _round_up(v, m):
    return ((v + m - 1) // m) * m


# ----------------------------- Pallas kernel --------------------------------
def _gcn_fused_kernel(*refs, num_layers):
    """Fused GCN stack: h <- act(A @ (h @ W_l) + b_l) for all layers.

    Ref layout: (a, x, w_0, b_0, ..., w_{L-1}, b_{L-1}, out).
    A / x / W are bf16 VMEM residents (small-graph regime); both matmuls per
    layer run on the MXU with f32 accumulation, the bias + activation epilogue
    stays in f32 on the VPU/EUP, and the intermediate h never leaves on-chip
    memory.  Only the final f32 sigmoid slab is stored to HBM (lane-dense).
    """
    a_ref, x_ref = refs[0], refs[1]
    o_ref = refs[-1]
    wb_refs = refs[2:-1]

    a = a_ref[...]                                   # bf16 [n_pad, n_pad]
    h = x_ref[...]                                   # bf16 [n_pad, f0_pad]
    for li in range(num_layers):
        w = wb_refs[2 * li][...]                     # bf16 [fi_pad, fo_pad]
        b = wb_refs[2 * li + 1][...]                 # f32  [1, fo_pad]
        xw = jnp.dot(h, w, preferred_element_type=jnp.float32)
        agg = jnp.dot(a, xw.astype(jnp.bfloat16),
                      preferred_element_type=jnp.float32)
        z = agg + b
        if li < num_layers - 1:
            # ReLU (+ dropout identity in eval); cast back to bf16 for next MXU pass.
            h = jnp.maximum(z, 0.0).astype(jnp.bfloat16)
        else:
            h = jax.nn.sigmoid(z)                    # final activation, f32
    o_ref[...] = h.astype(o_ref.dtype)


# ----------------------------- Forward builder -------------------------------
def make_gcn_forward(params, adjacency, num_nodes):
    """Pre-pad static operands (A, W, b) once and return a jitted forward(x).

    params: list of (W [fi, fo] f32, b [1, fo] f32)
    adjacency: dense [num_nodes, num_nodes] f32 aggregation matrix
    Returns: forward(x: [num_nodes, in_channels]) -> [num_nodes, out_channels]
    """
    num_layers = len(params)
    f_in = params[0][0].shape[0]
    out_channels = params[-1][0].shape[1]

    # Per-layer feature padding (lane-dense) and lane-aligned node padding.
    dims = [f_in] + [w.shape[1] for (w, _) in params]
    dims_pad = [_round_up(d, LANE) for d in dims]
    n_pad = _round_up(num_nodes, LANE)

    # Static padded operands (built once, reused every call).  Zero padding is
    # exact: padded A rows/cols are zero so padded-node values never leak into
    # real rows; padded feature columns stay zero through every ReLU layer.
    a_pad = (
        jnp.zeros((n_pad, n_pad), jnp.bfloat16)
        .at[:num_nodes, :num_nodes]
        .set(adjacency.astype(jnp.bfloat16))  # small integer counts: exact in bf16
    )
    wb_pad = []
    for li, (w, b) in enumerate(params):
        fi, fo = w.shape
        fi_p, fo_p = dims_pad[li], dims_pad[li + 1]
        w_p = (jnp.zeros((fi_p, fo_p), jnp.bfloat16)
               .at[:fi, :fo].set(w.astype(jnp.bfloat16)))
        b_p = (jnp.zeros((1, fo_p), jnp.float32)
               .at[:, :fo].set(b.reshape(1, -1).astype(jnp.float32)))
        wb_pad += [w_p, b_p]
    wb_pad = tuple(wb_pad)

    # Cost estimate: 2*(n*fi*fo) for h@W, 2*(n^2*fo) for A@(hW), per layer.
    flops = 0
    for li in range(num_layers):
        fi_p, fo_p = dims_pad[li], dims_pad[li + 1]
        flops += 2 * n_pad * fi_p * fo_p + 2 * n_pad * n_pad * fo_p
    bytes_in = (a_pad.size * 2 + n_pad * dims_pad[0] * 2
                + sum(r.size * r.dtype.itemsize for r in wb_pad))
    bytes_out = n_pad * dims_pad[-1] * 4
    transcendentals = n_pad * dims_pad[-1]  # final sigmoid (exp on EUP)

    # VMEM budget: all residents + headroom for the f32 intermediates.
    resident = bytes_in + bytes_out + 4 * n_pad * max(dims_pad) * 4
    vmem_limit = int(min(max(2 * resident, 4 << 20), 48 << 20))

    kernel = functools.partial(_gcn_fused_kernel, num_layers=num_layers)
    vmem_spec = pl.BlockSpec(memory_space=pltpu.MemorySpace.VMEM)

    gcn_call = pl.pallas_call(
        kernel,
        out_shape=jax.ShapeDtypeStruct((n_pad, dims_pad[-1]), jnp.float32),
        in_specs=[vmem_spec] * (2 + 2 * num_layers),
        out_specs=vmem_spec,
        compiler_params=pltpu.CompilerParams(vmem_limit_bytes=vmem_limit),
        cost_estimate=pl.CostEstimate(
            flops=int(flops),
            transcendentals=int(transcendentals),
            bytes_accessed=int(bytes_in + bytes_out),
        ),
    )

    @jax.jit
    def forward(x):
        n, f = x.shape
        x_pad = (jnp.zeros((n_pad, dims_pad[0]), jnp.bfloat16)
                 .at[:n, :f].set(x.astype(jnp.bfloat16)))
        out_pad = gcn_call(a_pad, x_pad, *wb_pad)
        # Slice the logical block back out (padded lanes carry sigmoid(0)=0.5,
        # padded rows carry sigmoid(b)); never expose out_pad directly.
        return out_pad[:num_nodes, :out_channels]

    return forward


# ----------------------------- Model helpers ---------------------------------
def init_gcn_params(key, in_channels, hidden_channels, out_channels, num_layers):
    """Deterministic glorot-uniform-ish init matching GCNConv layer shapes."""
    dims = [in_channels] + [hidden_channels] * (num_layers - 1) + [out_channels]
    params = []
    for li in range(num_layers):
        key, wk = jax.random.split(key)
        fan_in, fan_out = dims[li], dims[li + 1]
        limit = jnp.sqrt(6.0 / (fan_in + fan_out))
        w = jax.random.uniform(wk, (fan_in, fan_out), jnp.float32, -limit, limit)
        b = jnp.zeros((1, fan_out), jnp.float32)
        params.append((w, b))
    return params


def build_dense_adjacency(edge_index, num_nodes, edge_weight=None):
    """A[dst, src] += w for each edge (src, dst) — GCNConv aggregation matrix."""
    src, dst = edge_index[0], edge_index[1]
    if edge_weight is None:
        edge_weight = jnp.ones(src.shape, jnp.float32)
    a = jnp.zeros((num_nodes, num_nodes), jnp.float32)
    return a.at[dst, src].add(edge_weight)


def gcn_reference(params, x, adjacency):
    """Pure-JAX f32 reference of the same forward pass (for correctness check)."""
    h = x
    hp = jax.lax.Precision.HIGHEST
    for (w, b) in params[:-1]:
        h = jnp.maximum(adjacency @ jnp.dot(h, w, precision=hp) + b, 0.0)
    w, b = params[-1]
    return jax.nn.sigmoid(adjacency @ jnp.dot(h, w, precision=hp) + b)


# --------------------------------- Main --------------------------------------
if __name__ == "__main__":
    num_nodes = 32
    in_channels = 16
    hidden_channels = 32
    out_channels = 8
    num_layers = 3
    num_edges = 96

    key = jax.random.PRNGKey(0)
    k_x, k_src, k_dst, k_params = jax.random.split(key, 4)

    x = jax.random.normal(k_x, (num_nodes, in_channels), jnp.float32)
    src = jax.random.randint(k_src, (num_edges,), 0, num_nodes, jnp.int32)
    dst = jax.random.randint(k_dst, (num_edges,), 0, num_nodes, jnp.int32)
    edge_index = jnp.stack([src, dst], axis=0)  # [2, num_edges], PyG convention

    params = init_gcn_params(
        k_params, in_channels, hidden_channels, out_channels, num_layers
    )
    adjacency = build_dense_adjacency(edge_index, num_nodes)

    forward = make_gcn_forward(params, adjacency, num_nodes)
    out = jax.block_until_ready(forward(x))

    assert out.shape == (num_nodes, out_channels)
    assert bool(jnp.all(jnp.isfinite(out)))
    assert bool(jnp.all((out >= 0.0) & (out <= 1.0)))  # sigmoid output range

    ref = gcn_reference(params, x, adjacency)
    # bf16 matmul operands + f32 accumulation: loosen tolerance accordingly.
    assert bool(jnp.allclose(out, ref, rtol=2e-2, atol=2.5e-2)), (
        float(jnp.max(jnp.abs(out - ref)))
    )

    print("KERNEL_OK")
</pallas_src>

<mosaic_0001>
module attributes {stable_mosaic.version = 11 : i64} {
  func.func @_gcn_fused_kernel(%arg0: memref<128x128xbf16, #tpu.memory_space<vmem>>, %arg1: memref<128x128xbf16, #tpu.memory_space<vmem>>, %arg2: memref<128x128xbf16, #tpu.memory_space<vmem>>, %arg3: memref<1x128xf32, #tpu.memory_space<vmem>>, %arg4: memref<128x128xbf16, #tpu.memory_space<vmem>>, %arg5: memref<1x128xf32, #tpu.memory_space<vmem>>, %arg6: memref<128x128xbf16, #tpu.memory_space<vmem>>, %arg7: memref<1x128xf32, #tpu.memory_space<vmem>>, %arg8: memref<128x128xf32, #tpu.memory_space<vmem>>) attributes {dimension_semantics = [], scalar_prefetch = 0 : i64, scratch_operands = 0 : i64, tpu.core_type = #tpu.core_type<tc>} {
    %c0 = arith.constant 0 : index
    %c0_0 = arith.constant 0 : index
    %0 = vector.load %arg0[%c0, %c0_0] : memref<128x128xbf16, #tpu.memory_space<vmem>>, vector<128x128xbf16>
    %c0_1 = arith.constant 0 : index
    %c0_2 = arith.constant 0 : index
    %1 = vector.load %arg1[%c0_1, %c0_2] : memref<128x128xbf16, #tpu.memory_space<vmem>>, vector<128x128xbf16>
    %c0_3 = arith.constant 0 : index
    %c0_4 = arith.constant 0 : index
    %2 = vector.load %arg2[%c0_3, %c0_4] : memref<128x128xbf16, #tpu.memory_space<vmem>>, vector<128x128xbf16>
    %c0_5 = arith.constant 0 : index
    %c0_6 = arith.constant 0 : index
    %3 = vector.load %arg3[%c0_5, %c0_6] : memref<1x128xf32, #tpu.memory_space<vmem>>, vector<1x128xf32>
    %cst = arith.constant dense<0.000000e+00> : vector<128x128xf32>
    %4 = tpu.matmul %1, %2, %cst {dimension_numbers = #tpu.dot_dimension_numbers<[1], [0], [0], [1], [0, 0, 1, 1], [], []>} : vector<128x128xbf16>, vector<128x128xbf16>, vector<128x128xf32> -> vector<128x128xf32>
    %5 = arith.truncf %4 : vector<128x128xf32> to vector<128x128xbf16>
    %cst_7 = arith.constant dense<0.000000e+00> : vector<128x128xf32>
    %6 = tpu.matmul %0, %5, %cst_7 {dimension_numbers = #tpu.dot_dimension_numbers<[1], [0], [0], [1], [0, 0, 1, 1], [], []>} : vector<128x128xbf16>, vector<128x128xbf16>, vector<128x128xf32> -> vector<128x128xf32>
    %7 = vector.broadcast %3 : vector<1x128xf32> to vector<128x128xf32>
    %8 = arith.addf %6, %7 : vector<128x128xf32>
    %cst_8 = arith.constant 0.000000e+00 : f32
    %9 = vector.broadcast %cst_8 : f32 to vector<128x128xf32>
    %10 = arith.maximumf %8, %9 : vector<128x128xf32>
    %11 = arith.truncf %10 : vector<128x128xf32> to vector<128x128xbf16>
    %c0_9 = arith.constant 0 : index
    %c0_10 = arith.constant 0 : index
    %12 = vector.load %arg4[%c0_9, %c0_10] : memref<128x128xbf16, #tpu.memory_space<vmem>>, vector<128x128xbf16>
    %c0_11 = arith.constant 0 : index
    %c0_12 = arith.constant 0 : index
    %13 = vector.load %arg5[%c0_11, %c0_12] : memref<1x128xf32, #tpu.memory_space<vmem>>, vector<1x128xf32>
    %cst_13 = arith.constant dense<0.000000e+00> : vector<128x128xf32>
    %14 = tpu.matmul %11, %12, %cst_13 {dimension_numbers = #tpu.dot_dimension_numbers<[1], [0], [0], [1], [0, 0, 1, 1], [], []>} : vector<128x128xbf16>, vector<128x128xbf16>, vector<128x128xf32> -> vector<128x128xf32>
    %15 = arith.truncf %14 : vector<128x128xf32> to vector<128x128xbf16>
    %cst_14 = arith.constant dense<0.000000e+00> : vector<128x128xf32>
    %16 = tpu.matmul %0, %15, %cst_14 {dimension_numbers = #tpu.dot_dimension_numbers<[1], [0], [0], [1], [0, 0, 1, 1], [], []>} : vector<128x128xbf16>, vector<128x128xbf16>, vector<128x128xf32> -> vector<128x128xf32>
    %17 = vector.broadcast %13 : vector<1x128xf32> to vector<128x128xf32>
    %18 = arith.addf %16, %17 : vector<128x128xf32>
    %cst_15 = arith.constant 0.000000e+00 : f32
    %19 = vector.broadcast %cst_15 : f32 to vector<128x128xf32>
    %20 = arith.maximumf %18, %19 : vector<128x128xf32>
    %21 = arith.truncf %20 : vector<128x128xf32> to vector<128x128xbf16>
    %c0_16 = arith.constant 0 : index
    %c0_17 = arith.constant 0 : index
    %22 = vector.load %arg6[%c0_16, %c0_17] : memref<128x128xbf16, #tpu.memory_space<vmem>>, vector<128x128xbf16>
    %c0_18 = arith.constant 0 : index
    %c0_19 = arith.constant 0 : index
    %23 = vector.load %arg7[%c0_18, %c0_19] : memref<1x128xf32, #tpu.memory_space<vmem>>, vector<1x128xf32>
    %cst_20 = arith.constant dense<0.000000e+00> : vector<128x128xf32>
    %24 = tpu.matmul %21, %22, %cst_20 {dimension_numbers = #tpu.dot_dimension_numbers<[1], [0], [0], [1], [0, 0, 1, 1], [], []>} : vector<128x128xbf16>, vector<128x128xbf16>, vector<128x128xf32> -> vector<128x128xf32>
    %25 = arith.truncf %24 : vector<128x128xf32> to vector<128x128xbf16>
    %cst_21 = arith.constant dense<0.000000e+00> : vector<128x128xf32>
    %26 = tpu.matmul %0, %25, %cst_21 {dimension_numbers = #tpu.dot_dimension_numbers<[1], [0], [0], [1], [0, 0, 1, 1], [], []>} : vector<128x128xbf16>, vector<128x128xbf16>, vector<128x128xf32> -> vector<128x128xf32>
    %27 = vector.broadcast %23 : vector<1x128xf32> to vector<128x128xf32>
    %28 = arith.addf %26, %27 : vector<128x128xf32>
    %29 = arith.negf %28 : vector<128x128xf32>
    %30 = math.exp %29 : vector<128x128xf32>
    %cst_22 = arith.constant 1.000000e+00 : f32
    %31 = vector.broadcast %cst_22 : f32 to vector<128x128xf32>
    %32 = arith.addf %31, %30 : vector<128x128xf32>
    %33 = arith.divf %31, %32 : vector<128x128xf32>
    %c0_23 = arith.constant 0 : index
    %c0_24 = arith.constant 0 : index
    %34 = vector.load %arg8[%c0_23, %c0_24] : memref<128x128xf32, #tpu.memory_space<vmem>>, vector<128x128xf32>
    tpu.vector_store %arg8[%c0_23, %c0_24], %33 {strides = array<i32>} : memref<128x128xf32, #tpu.memory_space<vmem>>, vector<128x128xf32>,
    return
  }
}

</mosaic_0001>

<bundles_post_ra>
// kernel: forward.1
= control target key start
LH: loop header
LB: loop body
LE: loop exit
PB: predicated region body
PF: predicated region fallthrough
CT: control target
= control target key end

     0   :  { %13 = vsyncpa [#allocation3], 0  ;;  %s1682_s0 = inlined_call_operand.hbm [shape: bf16[128,128], index: 0, kind: input, shape index: {}]   ;;  %s1683_s1 = inlined_call_operand.vmem [shape: bf16[128,128], index: 1, kind: input, shape index: {}]   ;;  %s1684_s2 = inlined_call_operand.hbm [shape: bf16[128,128], index: 2, kind: input, shape index: {}]   ;;  %s1685_s3 = inlined_call_operand.vmem [shape: f32[1,128], index: 3, kind: input, shape index: {}, may-alias: {3,5,7}]   ;;  %s1686_s4 = inlined_call_operand.vmem [shape: bf16[128,128], index: 4, kind: input, shape index: {}]   ;;  %s1687_s5 = inlined_call_operand.vmem [shape: f32[1,128], index: 5, kind: input, shape index: {}, may-alias: {3,5,7}]   ;;  %s1688_s6 = inlined_call_operand.vmem [shape: bf16[128,128], index: 6, kind: input, shape index: {}]   ;;  %s1689_s7 = inlined_call_operand.vmem [shape: f32[1,128], index: 7, kind: input, shape index: {}, may-alias: {3,5,7}]   ;;  %s1690_s8 = inlined_call_operand.vmem [shape: f32[128,128], index: 8, kind: output, shape index: {}]  }
   0x1   :  { %s19_s29 = sshll.u32 %s1682_s0, 4  ;;  %s20_s29 = int_to_ptr.hbm [resolvable:$true] %s19_s29 }
   0x2   :  { %14 = vsyncpa [#allocation5], 0  ;;  %s1440_s30 = smov [#allocation2]   ;;  %s34_s12 = sshll.u32 %s1684_s2, 4  ;;  %s35_s12 = int_to_ptr.hbm [resolvable:$true] %s34_s12 }
   0x3   :  { %s21_s9 = sshll.u32 %s1440_s30, 4  ;;  %s1441_s13 = smov 64   ;;  %s22_s9 = int_to_ptr.vmem [resolvable:$true] %s21_s9 }
   0x4   :  { %s1442_s14 = smov 4   ;;  %s1443_s15 = smov [#allocation4]  }
   0x5   :  { %27 = dma.hbm_to_vmem [thread:$0]  %s20_s29, 1024, %s22_s9, [#allocation3], %s1441_s13, %s1441_s13, %s1442_s14  }
   0x6   :  { %s36_s16 = sshll.u32 %s1443_s15, 4  ;;  %s37_s16 = int_to_ptr.vmem [resolvable:$true] %s36_s16 }
   0x7   :  { %42 = dma.hbm_to_vmem [thread:$0]  %s35_s12, 1024, %s37_s16, [#allocation5], %s1441_s13, %s1441_s13, %s1442_s14  }
   0x8   :  { %1436 = dma.done.wait [#allocation3], 1024  }
   0x9   :  { %1437 = vsyncadd [#allocation3], 4294966272 }
   0xa   :  { %1438 = dma.done.wait [#allocation5], 1024  }
   0xb   :  { %1439 = vsyncadd [#allocation5], 4294966272  ;;  %v1284_v0 = vld [vmem:[#allocation4 + $0x38] sm:$0xff]  ;;  %v1283_v1 = vld [vmem:[#allocation4 + $0x30] sm:$0xff] }
   0xc   :  { %1301 = vmatpush.bf16.msra.mxu2 %v1284_v0  ;;  %206 = vmatpush.bf16.msra.mxu0 %v1284_v0  ;;  %v1282_v2 = vld [vmem:[#allocation4 + $0x28] sm:$0xff]  ;;  %v1281_v3 = vld [vmem:[#allocation4 + $0x20] sm:$0xff]  ;;  %v1280_v4 = vld [vmem:[#allocation4 + $0x18] sm:$0xff] }
   0xd   :  { %v1279_v5 = vld [vmem:[#allocation4 + $0x10] sm:$0xff]  ;;  %v1278_v6 = vld [vmem:[#allocation4 + $0x8] sm:$0xff]  ;;  %v1277_v7 = vld [vmem:[#allocation4] sm:$0xff] }
   0xe   :  { %v1273_v8 = vld [vmem:[%s1683_s1 + $0x20] sm:$0xff]  ;;  %v1274_v10 = vld [vmem:[%s1683_s1 + $0x28] sm:$0xff]  ;;  %v1275_v12 = vld [vmem:[%s1683_s1 + $0x30] sm:$0xff] }
   0xf   :  { %v1269_v9 = vld [vmem:[%s1683_s1] sm:$0xff]  ;;  %v1270_v11 = vld [vmem:[%s1683_s1 + $0x8] sm:$0xff]  ;;  %v1271_v13 = vld [vmem:[%s1683_s1 + $0x10] sm:$0xff] }
  0x10   :  { %1302 = vmatpush.bf16.msra.mxu2 %v1283_v1  ;;  %207 = vmatpush.bf16.msra.mxu0 %v1283_v1  ;;  %v1276_v14 = vld [vmem:[%s1683_s1 + $0x38] sm:$0xff]  ;;  %v1519_v40 = vld [vmem:[#allocation2] sm:$0xff]  ;;  %v1522_v41 = vld [vmem:[#allocation2 + $0x8] sm:$0xff] }
  0x11   :  { %v1272_v15 = vld [vmem:[%s1683_s1 + $0x18] sm:$0xff]  ;;  %v1525_v42 = vld [vmem:[#allocation2 + $0x20] sm:$0xff]  ;;  %v1528_v43 = vld [vmem:[#allocation2 + $0x10] sm:$0xff] }
  0x12   :  { %v1530_v44 = vld [vmem:[#allocation2 + $0x28] sm:$0xff]  ;;  %v1292_v45 = vld [vmem:[%s1686_s4 + $0x38] sm:$0xff]  ;;  %v1291_v46 = vld [vmem:[%s1686_s4 + $0x30] sm:$0xff] }
  0x13   :  { %v1290_v47 = vld [vmem:[%s1686_s4 + $0x28] sm:$0xff]  ;;  %v1543_v48 = vld [vmem:[#allocation2 + $0x18] sm:$0xff]  ;;  %v1289_v49 = vld [vmem:[%s1686_s4 + $0x20] sm:$0xff] }
  0x14   :  { %1303 = vmatpush.bf16.msra.mxu2 %v1282_v2  ;;  %208 = vmatpush.bf16.msra.mxu0 %v1282_v2  ;;  %v1548_v50 = vld [vmem:[#allocation2 + $0x30] sm:$0xff]  ;;  %v1552_v51 = vld [vmem:[#allocation2 + $0x38] sm:$0xff]  ;;  %v1286_v54 = vld [vmem:[%s1686_s4 + $0x8] sm:$0xff] }
  0x15   :  { %v1288_v52 = vld [vmem:[%s1686_s4 + $0x18] sm:$0xff]  ;;  %v1287_v53 = vld [vmem:[%s1686_s4 + $0x10] sm:$0xff]  ;;  %v1285_v55 = vld [vmem:[%s1686_s4] sm:$0xff] }
  0x16   :  { %v1321_v57 = vld [vmem:[%s1685_s3] ss:$0 sm:$0xff] }
  0x18   :  { %1304 = vmatpush.bf16.msra.mxu2 %v1281_v3  ;;  %209 = vmatpush.bf16.msra.mxu0 %v1281_v3 }
  0x1c   :  { %1305 = vmatpush.bf16.msra.mxu2 %v1280_v4  ;;  %210 = vmatpush.bf16.msra.mxu0 %v1280_v4 }
  0x20   :  { %1306 = vmatpush.bf16.msra.mxu2 %v1279_v5  ;;  %211 = vmatpush.bf16.msra.mxu0 %v1279_v5 }
  0x24   :  { %1307 = vmatpush.bf16.msra.mxu2 %v1278_v6  ;;  %212 = vmatpush.bf16.msra.mxu0 %v1278_v6 }
  0x28   :  { %1308 = vmatpush.bf16.msra.mxu2 %v1277_v7  ;;  %213 = vmatpush.bf16.msra.mxu0 %v1277_v7 }
  0x2b   :  { %234 = vmatmul.bf16.vlgmr.msra.gmra.mxu2 %v1273_v8  ;;  %214 = vmatmul.bf16.vlgmr.msra.gmra.mxu0 %v1269_v9 }
  0x2c   :  { %452 = vmatpush.bf16.msrb.mxu2 %v1292_v45 }
  0x30   :  { %453 = vmatpush.bf16.msrb.mxu2 %v1291_v46 }
  0x34   :  { %454 = vmatpush.bf16.msrb.mxu2 %v1290_v47 }
  0x38   :  { %455 = vmatpush.bf16.msrb.mxu2 %v1289_v49 }
  0x3b   :  { %239 = vmatmul.bf16.gmra.mxu2 %v1274_v10  ;;  %219 = vmatmul.bf16.gmra.mxu0 %v1270_v11 }
  0x3c   :  { %456 = vmatpush.bf16.msrb.mxu2 %v1288_v52 }
  0x40   :  { %457 = vmatpush.bf16.msrb.mxu2 %v1287_v53 }
  0x44   :  { %458 = vmatpush.bf16.msrb.mxu2 %v1286_v54 }
  0x48   :  { %459 = vmatpush.bf16.msrb.mxu2 %v1285_v55 }
  0x4b   :  { %244 = vmatmul.bf16.gmra.mxu2 %v1275_v12  ;;  %224 = vmatmul.bf16.gmra.mxu0 %v1271_v13 }
  0x5b   :  { %249 = vmatmul.bf16.gmra.mxu2 %v1276_v14  ;;  %229 = vmatmul.bf16.gmra.mxu0 %v1272_v15 }
  0xa8   :  { %v215_v17 = vpop.f32.mrf.mxu0 }
  0xae   :  { %v235_v16 = vpop.f32.mrf.mxu2 }
  0xb0   :  { %v217_v19 = vpop.f32.mrf.mxu0 }
  0xb1   :  { %v255_v39 = vpack.c.bf16 %v217_v19, %v215_v17 }
  0xb6   :  { %v237_v18 = vpop.f32.mrf.mxu2 }
  0xb7   :  { %v259_v34 = vpack.c.bf16 %v237_v18, %v235_v16 }
  0xb8   :  { %v220_v21 = vpop.f32.mrf.mxu0 }
  0xbe   :  { %v240_v20 = vpop.f32.mrf.mxu2 }
  0xc0   :  { %v222_v23 = vpop.f32.mrf.mxu0 }
  0xc1   :  { %v256_v38 = vpack.c.bf16 %v222_v23, %v220_v21 }
  0xc6   :  { %v242_v22 = vpop.f32.mrf.mxu2 }
  0xc7   :  { %v260_v33 = vpack.c.bf16 %v242_v22, %v240_v20 }
  0xc8   :  { %v225_v25 = vpop.f32.mrf.mxu0 }
  0xce   :  { %v245_v24 = vpop.f32.mrf.mxu2 }
  0xd0   :  { %v227_v28 = vpop.f32.mrf.mxu0 }
  0xd1   :  { %v257_v37 = vpack.c.bf16 %v227_v28, %v225_v25 }
  0xd6   :  { %v247_v26 = vpop.f32.mrf.mxu2 }
  0xd7   :  { %v261_v32 = vpack.c.bf16 %v247_v26, %v245_v24 }
  0xd8   :  { %v230_v31 = vpop.f32.mrf.mxu0 }
  0xde   :  { %v250_v27 = vpop.f32.mrf.mxu2 }
  0xe0   :  { %v232_v35 = vpop.f32.mrf.mxu0 }
  0xe1   :  { %v258_v36 = vpack.c.bf16 %v232_v35, %v230_v31 }
  0xe6   :  { %v252_v29 = vpop.f32.mrf.mxu2 }
  0xe7   :  { %v262_v30 = vpack.c.bf16 %v252_v29, %v250_v27 }
  0xe9   :  { %314 = vmatpush.bf16.msra.mxu1 %v262_v30  ;;  %1309 = vmatpush.bf16.msra.mxu3 %v262_v30 }
  0xed   :  { %315 = vmatpush.bf16.msra.mxu1 %v261_v32  ;;  %1310 = vmatpush.bf16.msra.mxu3 %v261_v32 }
  0xf1   :  { %316 = vmatpush.bf16.msra.mxu1 %v260_v33  ;;  %1311 = vmatpush.bf16.msra.mxu3 %v260_v33 }
  0xf5   :  { %317 = vmatpush.bf16.msra.mxu1 %v259_v34  ;;  %1312 = vmatpush.bf16.msra.mxu3 %v259_v34 }
  0xf9   :  { %318 = vmatpush.bf16.msra.mxu1 %v258_v36  ;;  %1313 = vmatpush.bf16.msra.mxu3 %v258_v36 }
  0xfd   :  { %319 = vmatpush.bf16.msra.mxu1 %v257_v37  ;;  %1314 = vmatpush.bf16.msra.mxu3 %v257_v37 }
 0x101   :  { %320 = vmatpush.bf16.msra.mxu1 %v256_v38  ;;  %1315 = vmatpush.bf16.msra.mxu3 %v256_v38 }
 0x105   :  { %321 = vmatpush.bf16.msra.mxu1 %v255_v39  ;;  %1316 = vmatpush.bf16.msra.mxu3 %v255_v39 }
 0x108   :  { %322 = vmatmul.bf16.vlgmr.msra.gmra.mxu1 %v1519_v40  ;;  %342 = vmatmul.bf16.vlgmr.msra.gmra.mxu3 %v1525_v42 }
 0x118   :  { %327 = vmatmul.bf16.gmra.mxu1 %v1522_v41  ;;  %347 = vmatmul.bf16.gmra.mxu3 %v1530_v44 }
 0x128   :  { %332 = vmatmul.bf16.gmra.mxu1 %v1528_v43  ;;  %352 = vmatmul.bf16.gmra.mxu3 %v1548_v50 }
 0x138   :  { %337 = vmatmul.bf16.gmra.mxu1 %v1543_v48  ;;  %357 = vmatmul.bf16.gmra.mxu3 %v1552_v51 }
 0x185   :  { %v323_v56 = vpop.f32.mrf.mxu1 }
 0x186   :  { %v324_v58 = vadd.f32 %v1321_v57, %v323_v56 }
 0x188   :  { %v363_v61 = vmax.f32 %v324_v58, 0.0 }
 0x18b   :  { %v343_v13 = vpop.f32.mrf.mxu3 }
 0x18c   :  { %v344_v24 = vadd.f32 %v1321_v57, %v343_v13 }
 0x18d   :  { %v325_v59 = vpop.f32.mrf.mxu1 }
 0x18e   :  { %v326_v60 = vadd.f32 %v1321_v57, %v325_v59  ;;  %v371_v26 = vmax.f32 %v344_v24, 0.0  ;;  %v1293_v24 = vld [vmem:[%s1688_s6] sm:$0xff] }
 0x190   :  { %v364_v62 = vmax.f32 %v326_v60, 0.0 }
 0x192   :  { %v379_v63 = vpack.c.bf16 %v364_v62, %v363_v61 }
 0x193   :  { %v345_v16 = vpop.f32.mrf.mxu3 }
 0x194   :  { %460 = vmatmul.bf16.vlgmr.msrb.gmra.mxu2 %v379_v63  ;;  %v346_v25 = vadd.f32 %v1321_v57, %v345_v16 }
 0x195   :  { %v328_v0 = vpop.f32.mrf.mxu1 }
 0x196   :  { %v329_v1 = vadd.f32 %v1321_v57, %v328_v0  ;;  %v372_v27 = vmax.f32 %v346_v25, 0.0 }
 0x198   :  { %v365_v4 = vmax.f32 %v329_v1, 0.0  ;;  %v383_v29 = vpack.c.bf16 %v372_v27, %v371_v26  ;;  %v1322_v26 = vld [vmem:[%s1687_s5] ss:$0 sm:$0xff] }
 0x19b   :  { %v348_v23 = vpop.f32.mrf.mxu3 }
 0x19c   :  { %v349_v31 = vadd.f32 %v1321_v57, %v348_v23  ;;  %v1294_v23 = vld [vmem:[%s1688_s6 + $0x8] sm:$0xff] }
 0x19d   :  { %v330_v2 = vpop.f32.mrf.mxu1 }
 0x19e   :  { %v331_v3 = vadd.f32 %v1321_v57, %v330_v2  ;;  %v373_v33 = vmax.f32 %v349_v31, 0.0 }
 0x1a0   :  { %v366_v5 = vmax.f32 %v331_v3, 0.0 }
 0x1a2   :  { %v380_v6 = vpack.c.bf16 %v366_v5, %v365_v4 }
 0x1a3   :  { %v350_v28 = vpop.f32.mrf.mxu3 }
 0x1a4   :  { %465 = vmatmul.bf16.gmra.mxu2 %v380_v6  ;;  %v351_v32 = vadd.f32 %v1321_v57, %v350_v28 }
 0x1a5   :  { %v333_v7 = vpop.f32.mrf.mxu1 }
 0x1a6   :  { %v334_v8 = vadd.f32 %v1321_v57, %v333_v7  ;;  %v374_v34 = vmax.f32 %v351_v32, 0.0 }
 0x1a8   :  { %v367_v11 = vmax.f32 %v334_v8, 0.0  ;;  %v384_v35 = vpack.c.bf16 %v374_v34, %v373_v33 }
 0x1ab   :  { %v353_v30 = vpop.f32.mrf.mxu3 }
 0x1ac   :  { %v354_v37 = vadd.f32 %v1321_v57, %v353_v30 }
 0x1ad   :  { %v335_v9 = vpop.f32.mrf.mxu1 }
 0x1ae   :  { %v336_v10 = vadd.f32 %v1321_v57, %v335_v9  ;;  %v375_v45 = vmax.f32 %v354_v37, 0.0 }
 0x1b0   :  { %v368_v12 = vmax.f32 %v336_v10, 0.0 }
 0x1b2   :  { %v381_v14 = vpack.c.bf16 %v368_v12, %v367_v11 }
 0x1b3   :  { %v355_v36 = vpop.f32.mrf.mxu3 }
 0x1b4   :  { %470 = vmatmul.bf16.gmra.mxu2 %v381_v14  ;;  %v356_v38 = vadd.f32 %v1321_v57, %v355_v36 }
 0x1b5   :  { %v338_v15 = vpop.f32.mrf.mxu1 }
 0x1b6   :  { %v339_v17 = vadd.f32 %v1321_v57, %v338_v15  ;;  %v376_v46 = vmax.f32 %v356_v38, 0.0 }
 0x1b8   :  { %v369_v20 = vmax.f32 %v339_v17, 0.0  ;;  %v385_v47 = vpack.c.bf16 %v376_v46, %v375_v45  ;;  %v1300_v17 = vld [vmem:[%s1688_s6 + $0x38] sm:$0xff] }
 0x1b9   :  { %650 = vmatpush.bf16.msrb.mxu0 %v1300_v17 }
 0x1bb   :  { %v358_v39 = vpop.f32.mrf.mxu3 }
 0x1bc   :  { %v359_v52 = vadd.f32 %v1321_v57, %v358_v39 }
 0x1bd   :  { %v340_v18 = vpop.f32.mrf.mxu1 }
 0x1be   :  { %v341_v19 = vadd.f32 %v1321_v57, %v340_v18  ;;  %v377_v54 = vmax.f32 %v359_v52, 0.0  ;;  %v1299_v18 = vld [vmem:[%s1688_s6 + $0x30] sm:$0xff] }
 0x1bf   :  { %651 = vmatpush.bf16.msrb.mxu0 %v1299_v18 }
 0x1c0   :  { %v370_v21 = vmax.f32 %v341_v19, 0.0  ;;  %v1298_v19 = vld [vmem:[%s1688_s6 + $0x28] sm:$0xff] }
 0x1c2   :  { %v382_v22 = vpack.c.bf16 %v370_v21, %v369_v20  ;;  %v1297_v20 = vld [vmem:[%s1688_s6 + $0x20] sm:$0xff]  ;;  %v1296_v21 = vld [vmem:[%s1688_s6 + $0x18] sm:$0xff] }
 0x1c3   :  { %v360_v49 = vpop.f32.mrf.mxu3  ;;  %652 = vmatpush.bf16.msrb.mxu0 %v1298_v19 }
 0x1c4   :  { %475 = vmatmul.bf16.gmra.mxu2 %v382_v22  ;;  %v361_v53 = vadd.f32 %v1321_v57, %v360_v49  ;;  %v1295_v22 = vld [vmem:[%s1688_s6 + $0x10] sm:$0xff] }
 0x1c6   :  { %v378_v55 = vmax.f32 %v361_v53, 0.0 }
 0x1c7   :  { %653 = vmatpush.bf16.msrb.mxu0 %v1297_v20 }
 0x1c8   :  { %v386_v56 = vpack.c.bf16 %v378_v55, %v377_v54 }
 0x1cb   :  { %654 = vmatpush.bf16.msrb.mxu0 %v1296_v21 }
 0x1cf   :  { %655 = vmatpush.bf16.msrb.mxu0 %v1295_v22 }
 0x1d3   :  { %656 = vmatpush.bf16.msrb.mxu0 %v1294_v23 }
 0x1d4   :  { %480 = vmatmul.bf16.gmra.mxu2 %v383_v29 }
 0x1d7   :  { %657 = vmatpush.bf16.msrb.mxu0 %v1293_v24 }
 0x1e4   :  { %485 = vmatmul.bf16.gmra.mxu2 %v384_v35 }
 0x1f4   :  { %490 = vmatmul.bf16.gmra.mxu2 %v385_v47 }
 0x204   :  { %495 = vmatmul.bf16.gmra.mxu2 %v386_v56 }
 0x217   :  { %v461_v58 = vpop.f32.mrf.mxu2 }
 0x21f   :  { %v463_v59 = vpop.f32.mrf.mxu2 }
 0x220   :  { %v501_v60 = vpack.c.bf16 %v463_v59, %v461_v58 }
 0x227   :  { %v466_v61 = vpop.f32.mrf.mxu2 }
 0x22f   :  { %v468_v62 = vpop.f32.mrf.mxu2 }
 0x230   :  { %v502_v63 = vpack.c.bf16 %v468_v62, %v466_v61 }
 0x237   :  { %v471_v0 = vpop.f32.mrf.mxu2 }
 0x23f   :  { %v473_v1 = vpop.f32.mrf.mxu2 }
 0x240   :  { %v503_v2 = vpack.c.bf16 %v473_v1, %v471_v0 }
 0x247   :  { %v476_v3 = vpop.f32.mrf.mxu2 }
 0x24f   :  { %v478_v4 = vpop.f32.mrf.mxu2 }
 0x250   :  { %v504_v5 = vpack.c.bf16 %v478_v4, %v476_v3 }
 0x257   :  { %v481_v6 = vpop.f32.mrf.mxu2 }
 0x25f   :  { %v483_v7 = vpop.f32.mrf.mxu2 }
 0x260   :  { %v505_v16 = vpack.c.bf16 %v483_v7, %v481_v6 }
 0x267   :  { %v486_v8 = vpop.f32.mrf.mxu2 }
 0x26f   :  { %v488_v57 = vpop.f32.mrf.mxu2 }
 0x270   :  { %v506_v15 = vpack.c.bf16 %v488_v57, %v486_v8 }
 0x277   :  { %v491_v9 = vpop.f32.mrf.mxu2 }
 0x27f   :  { %v493_v10 = vpop.f32.mrf.mxu2 }
 0x280   :  { %v507_v14 = vpack.c.bf16 %v493_v10, %v491_v9 }
 0x287   :  { %v496_v11 = vpop.f32.mrf.mxu2 }
 0x28f   :  { %v498_v12 = vpop.f32.mrf.mxu2 }
 0x290   :  { %v508_v13 = vpack.c.bf16 %v498_v12, %v496_v11 }
 0x292   :  { %512 = vmatpush.bf16.msrb.mxu3 %v508_v13 }
 0x296   :  { %513 = vmatpush.bf16.msrb.mxu3 %v507_v14 }
 0x29a   :  { %514 = vmatpush.bf16.msrb.mxu3 %v506_v15 }
 0x29e   :  { %515 = vmatpush.bf16.msrb.mxu3 %v505_v16 }
 0x2a2   :  { %516 = vmatpush.bf16.msrb.mxu3 %v504_v5 }
 0x2a6   :  { %517 = vmatpush.bf16.msrb.mxu3 %v503_v2 }
 0x2aa   :  { %518 = vmatpush.bf16.msrb.mxu3 %v502_v63 }
 0x2ae   :  { %519 = vmatpush.bf16.msrb.mxu3 %v501_v60 }
 0x2b1   :  { %520 = vmatmul.bf16.vlgmr.msrb.gmra.mxu3 %v1519_v40 }
 0x2c1   :  { %525 = vmatmul.bf16.gmra.mxu3 %v1522_v41 }
 0x2d1   :  { %530 = vmatmul.bf16.gmra.mxu3 %v1528_v43 }
 0x2e1   :  { %535 = vmatmul.bf16.gmra.mxu3 %v1543_v48 }
 0x2f1   :  { %540 = vmatmul.bf16.gmra.mxu3 %v1525_v42 }
 0x301   :  { %545 = vmatmul.bf16.gmra.mxu3 %v1530_v44 }
 0x311   :  { %550 = vmatmul.bf16.gmra.mxu3 %v1548_v50 }
 0x321   :  { %555 = vmatmul.bf16.gmra.mxu3 %v1552_v51 }
 0x334   :  { %v521_v25 = vpop.f32.mrf.mxu3 }
 0x335   :  { %v522_v27 = vadd.f32 %v1322_v26, %v521_v25 }
 0x337   :  { %v561_v30 = vmax.f32 %v522_v27, 0.0 }
 0x33c   :  { %v523_v28 = vpop.f32.mrf.mxu3 }
 0x33d   :  { %v524_v29 = vadd.f32 %v1322_v26, %v523_v28 }
 0x33f   :  { %v562_v31 = vmax.f32 %v524_v29, 0.0 }
 0x341   :  { %v577_v32 = vpack.c.bf16 %v562_v31, %v561_v30 }
 0x343   :  { %658 = vmatmul.bf16.vlgmr.msrb.gmra.mxu0 %v577_v32 }
 0x344   :  { %v526_v33 = vpop.f32.mrf.mxu3 }
 0x345   :  { %v527_v34 = vadd.f32 %v1322_v26, %v526_v33 }
 0x347   :  { %v563_v37 = vmax.f32 %v527_v34, 0.0 }
 0x34c   :  { %v528_v35 = vpop.f32.mrf.mxu3 }
 0x34d   :  { %v529_v36 = vadd.f32 %v1322_v26, %v528_v35 }
 0x34f   :  { %v564_v38 = vmax.f32 %v529_v36, 0.0 }
 0x351   :  { %v578_v39 = vpack.c.bf16 %v564_v38, %v563_v37 }
 0x353   :  { %663 = vmatmul.bf16.gmra.mxu0 %v578_v39 }
 0x354   :  { %v531_v45 = vpop.f32.mrf.mxu3 }
 0x355   :  { %v532_v46 = vadd.f32 %v1322_v26, %v531_v45 }
 0x357   :  { %v565_v52 = vmax.f32 %v532_v46, 0.0 }
 0x35c   :  { %v533_v47 = vpop.f32.mrf.mxu3 }
 0x35d   :  { %v534_v49 = vadd.f32 %v1322_v26, %v533_v47 }
 0x35f   :  { %v566_v53 = vmax.f32 %v534_v49, 0.0 }
 0x361   :  { %v579_v54 = vpack.c.bf16 %v566_v53, %v565_v52 }
 0x363   :  { %668 = vmatmul.bf16.gmra.mxu0 %v579_v54 }
 0x364   :  { %v536_v55 = vpop.f32.mrf.mxu3 }
 0x365   :  { %v537_v56 = vadd.f32 %v1322_v26, %v536_v55 }
 0x367   :  { %v567_v60 = vmax.f32 %v537_v56, 0.0 }
 0x36c   :  { %v538_v58 = vpop.f32.mrf.mxu3 }
 0x36d   :  { %v539_v59 = vadd.f32 %v1322_v26, %v538_v58 }
 0x36f   :  { %v568_v61 = vmax.f32 %v539_v59, 0.0  ;;  %v1616_v59 = vld [vmem:[%s1689_s7] ss:$0 sm:$0xff] }
 0x371   :  { %v580_v62 = vpack.c.bf16 %v568_v61, %v567_v60 }
 0x373   :  { %673 = vmatmul.bf16.gmra.mxu0 %v580_v62 }
 0x374   :  { %v541_v63 = vpop.f32.mrf.mxu3 }
 0x375   :  { %v542_v0 = vadd.f32 %v1322_v26, %v541_v63 }
 0x377   :  { %v569_v3 = vmax.f32 %v542_v0, 0.0 }
 0x37c   :  { %v543_v1 = vpop.f32.mrf.mxu3 }
 0x37d   :  { %v544_v2 = vadd.f32 %v1322_v26, %v543_v1 }
 0x37f   :  { %v570_v4 = vmax.f32 %v544_v2, 0.0 }
 0x381   :  { %v581_v5 = vpack.c.bf16 %v570_v4, %v569_v3 }
 0x383   :  { %678 = vmatmul.bf16.gmra.mxu0 %v581_v5 }
 0x384   :  { %v546_v6 = vpop.f32.mrf.mxu3 }
 0x385   :  { %v547_v7 = vadd.f32 %v1322_v26, %v546_v6 }
 0x387   :  { %v571_v9 = vmax.f32 %v547_v7, 0.0 }
 0x38c   :  { %v548_v8 = vpop.f32.mrf.mxu3 }
 0x38d   :  { %v549_v57 = vadd.f32 %v1322_v26, %v548_v8 }
 0x38f   :  { %v572_v10 = vmax.f32 %v549_v57, 0.0 }
 0x391   :  { %v582_v11 = vpack.c.bf16 %v572_v10, %v571_v9 }
 0x393   :  { %683 = vmatmul.bf16.gmra.mxu0 %v582_v11 }
 0x394   :  { %v551_v12 = vpop.f32.mrf.mxu3 }
 0x395   :  { %v552_v13 = vadd.f32 %v1322_v26, %v551_v12 }
 0x397   :  { %v573_v16 = vmax.f32 %v552_v13, 0.0 }
 0x39c   :  { %v553_v14 = vpop.f32.mrf.mxu3 }
 0x39d   :  { %v554_v15 = vadd.f32 %v1322_v26, %v553_v14 }
 0x39f   :  { %v574_v17 = vmax.f32 %v554_v15, 0.0 }
 0x3a1   :  { %v583_v18 = vpack.c.bf16 %v574_v17, %v573_v16 }
 0x3a3   :  { %688 = vmatmul.bf16.gmra.mxu0 %v583_v18 }
 0x3a4   :  { %v556_v19 = vpop.f32.mrf.mxu3 }
 0x3a5   :  { %v557_v20 = vadd.f32 %v1322_v26, %v556_v19 }
 0x3a7   :  { %v575_v23 = vmax.f32 %v557_v20, 0.0 }
 0x3ac   :  { %v558_v21 = vpop.f32.mrf.mxu3 }
 0x3ad   :  { %v559_v22 = vadd.f32 %v1322_v26, %v558_v21 }
 0x3af   :  { %v576_v24 = vmax.f32 %v559_v22, 0.0 }
 0x3b1   :  { %v584_v25 = vpack.c.bf16 %v576_v24, %v575_v23 }
 0x3b3   :  { %693 = vmatmul.bf16.gmra.mxu0 %v584_v25 }
 0x3c0   :  { %v659_v27 = vpop.f32.mrf.mxu0 }
 0x3c8   :  { %v661_v28 = vpop.f32.mrf.mxu0 }
 0x3c9   :  { %v699_v29 = vpack.c.bf16 %v661_v28, %v659_v27 }
 0x3d0   :  { %v664_v30 = vpop.f32.mrf.mxu0 }
 0x3d8   :  { %v666_v31 = vpop.f32.mrf.mxu0 }
 0x3d9   :  { %v700_v32 = vpack.c.bf16 %v666_v31, %v664_v30 }
 0x3e0   :  { %v669_v33 = vpop.f32.mrf.mxu0 }
 0x3e8   :  { %v671_v34 = vpop.f32.mrf.mxu0 }
 0x3e9   :  { %v701_v35 = vpack.c.bf16 %v671_v34, %v669_v33 }
 0x3f0   :  { %v674_v36 = vpop.f32.mrf.mxu0 }
 0x3f8   :  { %v676_v37 = vpop.f32.mrf.mxu0 }
 0x3f9   :  { %v702_v38 = vpack.c.bf16 %v676_v37, %v674_v36 }
 0x400   :  { %v679_v39 = vpop.f32.mrf.mxu0 }
 0x408   :  { %v681_v45 = vpop.f32.mrf.mxu0 }
 0x409   :  { %v703_v58 = vpack.c.bf16 %v681_v45, %v679_v39 }
 0x410   :  { %v684_v46 = vpop.f32.mrf.mxu0 }
 0x418   :  { %v686_v26 = vpop.f32.mrf.mxu0 }
 0x419   :  { %v704_v56 = vpack.c.bf16 %v686_v26, %v684_v46 }
 0x420   :  { %v689_v47 = vpop.f32.mrf.mxu0 }
 0x428   :  { %v691_v49 = vpop.f32.mrf.mxu0 }
 0x429   :  { %v705_v55 = vpack.c.bf16 %v691_v49, %v689_v47 }
 0x430   :  { %v694_v52 = vpop.f32.mrf.mxu0 }
 0x438   :  { %v696_v53 = vpop.f32.mrf.mxu0 }
 0x439   :  { %v706_v54 = vpack.c.bf16 %v696_v53, %v694_v52 }
 0x43b   :  { %710 = vmatpush.bf16.msrb.mxu1 %v706_v54 }
 0x43f   :  { %711 = vmatpush.bf16.msrb.mxu1 %v705_v55 }
 0x443   :  { %712 = vmatpush.bf16.msrb.mxu1 %v704_v56 }
 0x447   :  { %713 = vmatpush.bf16.msrb.mxu1 %v703_v58 }
 0x44b   :  { %714 = vmatpush.bf16.msrb.mxu1 %v702_v38 }
 0x44f   :  { %715 = vmatpush.bf16.msrb.mxu1 %v701_v35 }
 0x453   :  { %716 = vmatpush.bf16.msrb.mxu1 %v700_v32 }
 0x457   :  { %717 = vmatpush.bf16.msrb.mxu1 %v699_v29 }
 0x45a   :  { %718 = vmatmul.bf16.vlgmr.msrb.gmra.mxu1 %v1519_v40 }
 0x46a   :  { %723 = vmatmul.bf16.gmra.mxu1 %v1522_v41 }
 0x47a   :  { %728 = vmatmul.bf16.gmra.mxu1 %v1528_v43 }
 0x48a   :  { %733 = vmatmul.bf16.gmra.mxu1 %v1543_v48 }
 0x49a   :  { %738 = vmatmul.bf16.gmra.mxu1 %v1525_v42 }
 0x4aa   :  { %743 = vmatmul.bf16.gmra.mxu1 %v1530_v44 }
 0x4ba   :  { %748 = vmatmul.bf16.gmra.mxu1 %v1548_v50 }
 0x4ca   :  { %753 = vmatmul.bf16.gmra.mxu1 %v1552_v51 }
 0x4d7   :  { %v719_v40 = vpop.f32.mrf.mxu1 }
 0x4d8   :  { %v720_v41 = vadd.f32 %v1616_v59, %v719_v40 }
 0x4da   :  { %v1245_v60 = vmul.f32 -1.442695, %v720_v41 }
 0x4dc   :  { %1324 = vpow2.f32 %v1245_v60 }
 0x4df   :  { %v721_v43 = vpop.f32.mrf.mxu1 }
 0x4e0   :  { %v722_v48 = vadd.f32 %v1616_v59, %v721_v43 }
 0x4e2   :  { %v1325_v42 = vpop.eup %1324  ;;  %v1246_v61 = vmul.f32 -1.442695, %v722_v48 }
 0x4e3   :  { %v807_v44 = vadd.f32 1.0, %v1325_v42 }
 0x4e4   :  { %1326 = vpow2.f32 %v1246_v61 }
 0x4e5   :  { %1328 = vrcp.f32 %v807_v44  ;;  %v834_v4 = vand.u32 2147483648, %v807_v44  ;;  %v832_v7 = vand.u32 2147483647, %v807_v44  ;;  %vm828_vm1 = vweird.f32 %v807_v44 }
 0x4e7   :  { %v724_v50 = vpop.f32.mrf.mxu1  ;;  %v835_v12 = vor.u32 1.1754944e-38, %v834_v4  ;;  %vm833_vm3 = vcmp.eq.f32.partialorder %v832_v7, 8.507059e+37 }
 0x4e8   :  { %v725_v51 = vadd.f32 %v1616_v59, %v724_v50 }
 0x4ea   :  { %v1327_v62 = vpop.eup %1326  ;;  %v1247_v63 = vmul.f32 -1.442695, %v725_v51 }
 0x4eb   :  { %v1329_v0 = vpop.eup %1328  ;;  %v808_v1 = vadd.f32 1.0, %v1327_v62 }
 0x4ec   :  { %v824_v2 = vmul.f32 %v1329_v0, %v807_v44  ;;  %1330 = vpow2.f32 %v1247_v63  ;;  %vm829_vm0 = vweird.f32 %v1329_v0 }
 0x4ed   :  { %1332 = vrcp.f32 %v808_v1  ;;  %vm830_vm2 = vmor %vm828_vm1, %vm829_vm0  ;;  %v849_v18 = vand.u32 2147483648, %v808_v1  ;;  %v847_v21 = vand.u32 2147483647, %v808_v1  ;;  %vm843_vm5 = vweird.f32 %v808_v1 }
 0x4ee   :  { %v825_v3 = vsub.f32 1.0, %v824_v2 }
 0x4ef   :  { %v726_v5 = vpop.f32.mrf.mxu1  ;;  %v850_v28 = vor.u32 1.1754944e-38, %v849_v18  ;;  %vm848_vm7 = vcmp.eq.f32.partialorder %v847_v21, 8.507059e+37 }
 0x4f0   :  { %v826_v6 = vmul.f32 %v1329_v0, %v825_v3  ;;  %v727_v8 = vadd.f32 %v1616_v59, %v726_v5 }
 0x4f2   :  { %v1331_v57 = vpop.eup %1330  ;;  %v827_v9 = vadd.f32 %v1329_v0, %v826_v6  ;;  %v1248_v10 = vmul.f32 -1.442695, %v727_v8 }
 0x4f3   :  { %v1333_v11 = vpop.eup %1332  ;;  %v809_v13 = vadd.f32 1.0, %v1331_v57 }
 0x4f4   :  { %v831_v14 = vsel %vm830_vm2, %v1329_v0, %v827_v9  ;;  %v839_v15 = vmul.f32 %v1333_v11, %v808_v1  ;;  %1334 = vpow2.f32 %v1248_v10  ;;  %vm844_vm4 = vweird.f32 %v1333_v11 }
 0x4f5   :  { %v836_v16 = vsel %vm833_vm3, %v835_v12, %v831_v14  ;;  %1336 = vrcp.f32 %v809_v13  ;;  %vm845_vm6 = vmor %vm843_vm5, %vm844_vm4  ;;  %v864_v34 = vand.u32 2147483648, %v809_v13  ;;  %v862_v37 = vand.u32 2147483647, %v809_v13 }
 0x4f6   :  { %1063 = vst [vmem:[%s1690_s8] sm:$0xff] %v836_v16  ;;  %v840_v17 = vsub.f32 1.0, %v839_v15  ;;  %vm858_vm9 = vweird.f32 %v809_v13 }
 0x4f7   :  { %v729_v19 = vpop.f32.mrf.mxu1  ;;  %v865_v47 = vor.u32 1.1754944e-38, %v864_v34  ;;  %vm863_vm11 = vcmp.eq.f32.partialorder %v862_v37, 8.507059e+37 }
 0x4f8   :  { %v841_v20 = vmul.f32 %v1333_v11, %v840_v17  ;;  %v730_v22 = vadd.f32 %v1616_v59, %v729_v19 }
 0x4fa   :  { %v1335_v23 = vpop.eup %1334  ;;  %v842_v24 = vadd.f32 %v1333_v11, %v841_v20  ;;  %v1249_v25 = vmul.f32 -1.442695, %v730_v22 }
 0x4fb   :  { %v1337_v27 = vpop.eup %1336  ;;  %v810_v29 = vadd.f32 1.0, %v1335_v23 }
 0x4fc   :  { %v846_v30 = vsel %vm845_vm6, %v1333_v11, %v842_v24  ;;  %v854_v31 = vmul.f32 %v1337_v27, %v809_v13  ;;  %1338 = vpow2.f32 %v1249_v25  ;;  %vm859_vm8 = vweird.f32 %v1337_v27 }
 0x4fd   :  { %v851_v32 = vsel %vm848_vm7, %v850_v28, %v846_v30  ;;  %1340 = vrcp.f32 %v810_v29  ;;  %vm860_vm10 = vmor %vm858_vm9, %vm859_vm8  ;;  %v879_v56 = vand.u32 2147483648, %v810_v29  ;;  %v877_v41 = vand.u32 2147483647, %v810_v29 }
 0x4fe   :  { %1064 = vst [vmem:[%s1690_s8 + $0x8] sm:$0xff] %v851_v32  ;;  %v855_v33 = vsub.f32 1.0, %v854_v31  ;;  %vm873_vm13 = vweird.f32 %v810_v29 }
 0x4ff   :  { %v731_v35 = vpop.f32.mrf.mxu1  ;;  %v880_v44 = vor.u32 1.1754944e-38, %v879_v56  ;;  %vm878_vm15 = vcmp.eq.f32.partialorder %v877_v41, 8.507059e+37 }
 0x500   :  { %v856_v36 = vmul.f32 %v1337_v27, %v855_v33  ;;  %v732_v38 = vadd.f32 %v1616_v59, %v731_v35 }
 0x502   :  { %v1339_v39 = vpop.eup %1338  ;;  %v857_v45 = vadd.f32 %v1337_v27, %v856_v36  ;;  %v1250_v46 = vmul.f32 -1.442695, %v732_v38 }
 0x503   :  { %v1341_v26 = vpop.eup %1340  ;;  %v811_v49 = vadd.f32 1.0, %v1339_v39 }
 0x504   :  { %v861_v52 = vsel %vm860_vm10, %v1337_v27, %v857_v45  ;;  %v869_v53 = vmul.f32 %v1341_v26, %v810_v29  ;;  %1342 = vpow2.f32 %v1250_v46  ;;  %vm874_vm12 = vweird.f32 %v1341_v26 }
 0x505   :  { %v866_v54 = vsel %vm863_vm11, %v865_v47, %v861_v52  ;;  %1344 = vrcp.f32 %v811_v49  ;;  %vm875_vm14 = vmor %vm873_vm13, %vm874_vm12  ;;  %v894_v1 = vand.u32 2147483648, %v811_v49  ;;  %v892_v4 = vand.u32 2147483647, %v811_v49 }
 0x506   :  { %1065 = vst [vmem:[%s1690_s8 + $0x10] sm:$0xff] %v866_v54  ;;  %v870_v55 = vsub.f32 1.0, %v869_v53  ;;  %vm888_vm1 = vweird.f32 %v811_v49 }
 0x507   :  { %v734_v58 = vpop.f32.mrf.mxu1  ;;  %v895_v9 = vor.u32 1.1754944e-38, %v894_v1  ;;  %vm893_vm3 = vcmp.eq.f32.partialorder %v892_v4, 8.507059e+37 }
 0x508   :  { %v871_v40 = vmul.f32 %v1341_v26, %v870_v55  ;;  %v735_v60 = vadd.f32 %v1616_v59, %v734_v58 }
 0x50a   :  { %v1343_v43 = vpop.eup %1342  ;;  %v872_v48 = vadd.f32 %v1341_v26, %v871_v40  ;;  %v1251_v42 = vmul.f32 -1.442695, %v735_v60 }
 0x50b   :  { %v1345_v61 = vpop.eup %1344  ;;  %v812_v50 = vadd.f32 1.0, %v1343_v43 }
 0x50c   :  { %v876_v51 = vsel %vm875_vm14, %v1341_v26, %v872_v48  ;;  %v884_v62 = vmul.f32 %v1345_v61, %v811_v49  ;;  %1346 = vpow2.f32 %v1251_v42  ;;  %vm889_vm0 = vweird.f32 %v1345_v61 }
 0x50d   :  { %v881_v63 = vsel %vm878_vm15, %v880_v44, %v876_v51  ;;  %1348 = vrcp.f32 %v812_v50  ;;  %vm890_vm2 = vmor %vm888_vm1, %vm889_vm0  ;;  %v909_v15 = vand.u32 2147483648, %v812_v50  ;;  %v907_v18 = vand.u32 2147483647, %v812_v50 }
 0x50e   :  { %1066 = vst [vmem:[%s1690_s8 + $0x18] sm:$0xff] %v881_v63  ;;  %v885_v0 = vsub.f32 1.0, %v884_v62  ;;  %vm903_vm5 = vweird.f32 %v812_v50 }
 0x50f   :  { %v736_v2 = vpop.f32.mrf.mxu1  ;;  %v910_v24 = vor.u32 1.1754944e-38, %v909_v15  ;;  %vm908_vm7 = vcmp.eq.f32.partialorder %v907_v18, 8.507059e+37 }
 0x510   :  { %v886_v3 = vmul.f32 %v1345_v61, %v885_v0  ;;  %v737_v5 = vadd.f32 %v1616_v59, %v736_v2 }
 0x512   :  { %v1347_v6 = vpop.eup %1346  ;;  %v887_v7 = vadd.f32 %v1345_v61, %v886_v3  ;;  %v1252_v8 = vmul.f32 -1.442695, %v737_v5 }
 0x513   :  { %v1349_v57 = vpop.eup %1348  ;;  %v813_v10 = vadd.f32 1.0, %v1347_v6 }
 0x514   :  { %v891_v11 = vsel %vm890_vm2, %v1345_v61, %v887_v7  ;;  %v899_v12 = vmul.f32 %v1349_v57, %v812_v50  ;;  %1350 = vpow2.f32 %v1252_v8  ;;  %vm904_vm4 = vweird.f32 %v1349_v57 }
 0x515   :  { %v896_v13 = vsel %vm893_vm3, %v895_v9, %v891_v11  ;;  %1352 = vrcp.f32 %v813_v10  ;;  %vm905_vm6 = vmor %vm903_vm5, %vm904_vm4  ;;  %v924_v31 = vand.u32 2147483648, %v813_v10  ;;  %v922_v34 = vand.u32 2147483647, %v813_v10 }
 0x516   :  { %1067 = vst [vmem:[%s1690_s8 + $0x20] sm:$0xff] %v896_v13  ;;  %v900_v14 = vsub.f32 1.0, %v899_v12  ;;  %vm918_vm9 = vweird.f32 %v813_v10 }
 0x517   :  { %v739_v16 = vpop.f32.mrf.mxu1  ;;  %v925_v45 = vor.u32 1.1754944e-38, %v924_v31  ;;  %vm923_vm11 = vcmp.eq.f32.partialorder %v922_v34, 8.507059e+37 }
 0x518   :  { %v901_v17 = vmul.f32 %v1349_v57, %v900_v14  ;;  %v740_v19 = vadd.f32 %v1616_v59, %v739_v16 }
 0x51a   :  { %v1351_v20 = vpop.eup %1350  ;;  %v902_v21 = vadd.f32 %v1349_v57, %v901_v17  ;;  %v1253_v22 = vmul.f32 -1.442695, %v740_v19 }
 0x51b   :  { %v1353_v23 = vpop.eup %1352  ;;  %v814_v25 = vadd.f32 1.0, %v1351_v20 }
 0x51c   :  { %v906_v27 = vsel %vm905_vm6, %v1349_v57, %v902_v21  ;;  %v914_v28 = vmul.f32 %v1353_v23, %v813_v10  ;;  %1354 = vpow2.f32 %v1253_v22  ;;  %vm919_vm8 = vweird.f32 %v1353_v23 }
 0x51d   :  { %v911_v29 = vsel %vm908_vm7, %v910_v24, %v906_v27  ;;  %1356 = vrcp.f32 %v814_v25  ;;  %vm920_vm10 = vmor %vm918_vm9, %vm919_vm8  ;;  %v939_v53 = vand.u32 2147483648, %v814_v25  ;;  %v937_v56 = vand.u32 2147483647, %v814_v25 }
 0x51e   :  { %1068 = vst [vmem:[%s1690_s8 + $0x28] sm:$0xff] %v911_v29  ;;  %v915_v30 = vsub.f32 1.0, %v914_v28  ;;  %vm933_vm13 = vweird.f32 %v814_v25 }
 0x51f   :  { %v741_v32 = vpop.f32.mrf.mxu1  ;;  %v940_v48 = vor.u32 1.1754944e-38, %v939_v53  ;;  %vm938_vm15 = vcmp.eq.f32.partialorder %v937_v56, 8.507059e+37 }
 0x520   :  { %v916_v33 = vmul.f32 %v1353_v23, %v915_v30  ;;  %v742_v35 = vadd.f32 %v1616_v59, %v741_v32 }
 0x522   :  { %v1355_v36 = vpop.eup %1354  ;;  %v917_v37 = vadd.f32 %v1353_v23, %v916_v33  ;;  %v1254_v38 = vmul.f32 -1.442695, %v742_v35 }
 0x523   :  { %v1357_v39 = vpop.eup %1356  ;;  %v815_v46 = vadd.f32 1.0, %v1355_v36 }
 0x524   :  { %v921_v26 = vsel %vm920_vm10, %v1353_v23, %v917_v37  ;;  %v929_v47 = vmul.f32 %v1357_v39, %v814_v25  ;;  %1358 = vpow2.f32 %v1254_v38  ;;  %vm934_vm12 = vweird.f32 %v1357_v39 }
 0x525   :  { %v926_v49 = vsel %vm923_vm11, %v925_v45, %v921_v26  ;;  %1360 = vrcp.f32 %v815_v46  ;;  %vm935_vm14 = vmor %vm933_vm13, %vm934_vm12  ;;  %v954_v62 = vand.u32 2147483648, %v815_v46  ;;  %v952_v1 = vand.u32 2147483647, %v815_v46 }
 0x526   :  { %1069 = vst [vmem:[%s1690_s8 + $0x30] sm:$0xff] %v926_v49  ;;  %v930_v52 = vsub.f32 1.0, %v929_v47  ;;  %vm948_vm1 = vweird.f32 %v815_v46 }
 0x527   :  { %v744_v54 = vpop.f32.mrf.mxu1  ;;  %v955_v7 = vor.u32 1.1754944e-38, %v954_v62  ;;  %vm953_vm3 = vcmp.eq.f32.partialorder %v952_v1, 8.507059e+37 }
 0x528   :  { %v931_v55 = vmul.f32 %v1357_v39, %v930_v52  ;;  %v745_v58 = vadd.f32 %v1616_v59, %v744_v54 }
 0x52a   :  { %v1359_v40 = vpop.eup %1358  ;;  %v932_v41 = vadd.f32 %v1357_v39, %v931_v55  ;;  %v1255_v60 = vmul.f32 -1.442695, %v745_v58 }
 0x52b   :  { %v1361_v43 = vpop.eup %1360  ;;  %v816_v42 = vadd.f32 1.0, %v1359_v40 }
 0x52c   :  { %v936_v61 = vsel %vm935_vm14, %v1357_v39, %v932_v41  ;;  %v944_v44 = vmul.f32 %v1361_v43, %v815_v46  ;;  %1362 = vpow2.f32 %v1255_v60  ;;  %vm949_vm0 = vweird.f32 %v1361_v43 }
 0x52d   :  { %v941_v50 = vsel %vm938_vm15, %v940_v48, %v936_v61  ;;  %1364 = vrcp.f32 %v816_v42  ;;  %vm950_vm2 = vmor %vm948_vm1, %vm949_vm0  ;;  %v969_v12 = vand.u32 2147483648, %v816_v42  ;;  %v967_v15 = vand.u32 2147483647, %v816_v42 }
 0x52e   :  { %1070 = vst [vmem:[%s1690_s8 + $0x38] sm:$0xff] %v941_v50  ;;  %v945_v51 = vsub.f32 1.0, %v944_v44  ;;  %vm963_vm5 = vweird.f32 %v816_v42 }
 0x52f   :  { %v746_v63 = vpop.f32.mrf.mxu1  ;;  %v970_v21 = vor.u32 1.1754944e-38, %v969_v12  ;;  %vm968_vm7 = vcmp.eq.f32.partialorder %v967_v15, 8.507059e+37 }
 0x530   :  { %v946_v0 = vmul.f32 %v1361_v43, %v945_v51  ;;  %v747_v2 = vadd.f32 %v1616_v59, %v746_v63 }
 0x532   :  { %v1363_v3 = vpop.eup %1362  ;;  %v947_v4 = vadd.f32 %v1361_v43, %v946_v0  ;;  %v1256_v5 = vmul.f32 -1.442695, %v747_v2 }
 0x533   :  { %v1365_v6 = vpop.eup %1364  ;;  %v817_v8 = vadd.f32 1.0, %v1363_v3 }
 0x534   :  { %v951_v57 = vsel %vm950_vm2, %v1361_v43, %v947_v4  ;;  %v959_v9 = vmul.f32 %v1365_v6, %v816_v42  ;;  %1366 = vpow2.f32 %v1256_v5  ;;  %vm964_vm4 = vweird.f32 %v1365_v6 }
 0x535   :  { %v956_v10 = vsel %vm953_vm3, %v955_v7, %v951_v57  ;;  %1368 = vrcp.f32 %v817_v8  ;;  %vm965_vm6 = vmor %vm963_vm5, %vm964_vm4  ;;  %v984_v28 = vand.u32 2147483648, %v817_v8  ;;  %v982_v31 = vand.u32 2147483647, %v817_v8 }
 0x536   :  { %1071 = vst [vmem:[%s1690_s8 + $0x40] sm:$0xff] %v956_v10  ;;  %v960_v11 = vsub.f32 1.0, %v959_v9  ;;  %vm978_vm9 = vweird.f32 %v817_v8 }
 0x537   :  { %v749_v13 = vpop.f32.mrf.mxu1  ;;  %v985_v37 = vor.u32 1.1754944e-38, %v984_v28  ;;  %vm983_vm11 = vcmp.eq.f32.partialorder %v982_v31, 8.507059e+37 }
 0x538   :  { %v961_v14 = vmul.f32 %v1365_v6, %v960_v11  ;;  %v750_v16 = vadd.f32 %v1616_v59, %v749_v13 }
 0x53a   :  { %v1367_v17 = vpop.eup %1366  ;;  %v962_v18 = vadd.f32 %v1365_v6, %v961_v14  ;;  %v1257_v19 = vmul.f32 -1.442695, %v750_v16 }
 0x53b   :  { %v1369_v20 = vpop.eup %1368  ;;  %v818_v22 = vadd.f32 1.0, %v1367_v17 }
 0x53c   :  { %v966_v23 = vsel %vm965_vm6, %v1365_v6, %v962_v18  ;;  %v974_v24 = vmul.f32 %v1369_v20, %v817_v8  ;;  %1370 = vpow2.f32 %v1257_v19  ;;  %vm979_vm8 = vweird.f32 %v1369_v20 }
 0x53d   :  { %v971_v25 = vsel %vm968_vm7, %v970_v21, %v966_v23  ;;  %1372 = vrcp.f32 %v818_v22  ;;  %vm980_vm10 = vmor %vm978_vm9, %vm979_vm8  ;;  %v999_v47 = vand.u32 2147483648, %v818_v22  ;;  %v997_v53 = vand.u32 2147483647, %v818_v22 }
 0x53e   :  { %1072 = vst [vmem:[%s1690_s8 + $0x48] sm:$0xff] %v971_v25  ;;  %v975_v27 = vsub.f32 1.0, %v974_v24  ;;  %vm993_vm13 = vweird.f32 %v818_v22 }
 0x53f   :  { %v751_v29 = vpop.f32.mrf.mxu1  ;;  %v1000_v41 = vor.u32 1.1754944e-38, %v999_v47  ;;  %vm998_vm15 = vcmp.eq.f32.partialorder %v997_v53, 8.507059e+37 }
 0x540   :  { %v976_v30 = vmul.f32 %v1369_v20, %v975_v27  ;;  %v752_v32 = vadd.f32 %v1616_v59, %v751_v29 }
 0x542   :  { %v1371_v33 = vpop.eup %1370  ;;  %v977_v34 = vadd.f32 %v1369_v20, %v976_v30  ;;  %v1258_v35 = vmul.f32 -1.442695, %v752_v32 }
 0x543   :  { %v1373_v36 = vpop.eup %1372  ;;  %v819_v38 = vadd.f32 1.0, %v1371_v33 }
 0x544   :  { %v981_v39 = vsel %vm980_vm10, %v1369_v20, %v977_v34  ;;  %v989_v45 = vmul.f32 %v1373_v36, %v818_v22  ;;  %1374 = vpow2.f32 %v1258_v35  ;;  %vm994_vm12 = vweird.f32 %v1373_v36 }
 0x545   :  { %v986_v46 = vsel %vm983_vm11, %v985_v37, %v981_v39  ;;  %1376 = vrcp.f32 %v819_v38  ;;  %vm995_vm14 = vmor %vm993_vm13, %vm994_vm12  ;;  %v1014_v44 = vand.u32 2147483648, %v819_v38  ;;  %v1012_v62 = vand.u32 2147483647, %v819_v38 }
 0x546   :  { %1073 = vst [vmem:[%s1690_s8 + $0x50] sm:$0xff] %v986_v46  ;;  %v990_v26 = vsub.f32 1.0, %v989_v45  ;;  %vm1008_vm1 = vweird.f32 %v819_v38 }
 0x547   :  { %v754_v49 = vpop.f32.mrf.mxu1  ;;  %v1015_v4 = vor.u32 1.1754944e-38, %v1014_v44  ;;  %vm1013_vm3 = vcmp.eq.f32.partialorder %v1012_v62, 8.507059e+37 }
 0x548   :  { %v991_v52 = vmul.f32 %v1373_v36, %v990_v26  ;;  %v755_v54 = vadd.f32 %v1616_v59, %v754_v49 }
 0x54a   :  { %v1375_v55 = vpop.eup %1374  ;;  %v992_v56 = vadd.f32 %v1373_v36, %v991_v52  ;;  %v1259_v58 = vmul.f32 -1.442695, %v755_v54 }
 0x54b   :  { %v1377_v40 = vpop.eup %1376  ;;  %v820_v60 = vadd.f32 1.0, %v1375_v55 }
 0x54c   :  { %v996_v43 = vsel %vm995_vm14, %v1373_v36, %v992_v56  ;;  %v1004_v48 = vmul.f32 %v1377_v40, %v819_v38  ;;  %1378 = vpow2.f32 %v1259_v58  ;;  %vm1009_vm0 = vweird.f32 %v1377_v40 }
 0x54d   :  { %v1001_v42 = vsel %vm998_vm15, %v1000_v41, %v996_v43  ;;  %1380 = vrcp.f32 %v820_v60  ;;  %vm1010_vm2 = vmor %vm1008_vm1, %vm1009_vm0  ;;  %v1027_v10 = vand.u32 2147483647, %v820_v60  ;;  %vm1023_vm5 = vweird.f32 %v820_v60 }
 0x54e   :  { %1074 = vst [vmem:[%s1690_s8 + $0x58] sm:$0xff] %v1001_v42  ;;  %v1005_v61 = vsub.f32 1.0, %v1004_v48 }
 0x54f   :  { %v756_v50 = vpop.f32.mrf.mxu1  ;;  %vm1028_vm7 = vcmp.eq.f32.partialorder %v1027_v10, 8.507059e+37 }
 0x550   :  { %v1006_v51 = vmul.f32 %v1377_v40, %v1005_v61  ;;  %v757_v63 = vadd.f32 %v1616_v59, %v756_v50  ;;  %v1029_v59 = vand.u32 2147483648, %v820_v60 }
 0x552   :  { %v1379_v0 = vpop.eup %1378  ;;  %v1007_v1 = vadd.f32 %v1377_v40, %v1006_v51  ;;  %v1260_v2 = vmul.f32 -1.442695, %v757_v63  ;;  %v1030_v14 = vor.u32 1.1754944e-38, %v1029_v59 }
 0x553   :  { %v1381_v3 = vpop.eup %1380  ;;  %v821_v5 = vadd.f32 1.0, %v1379_v0 }
 0x554   :  { %v1011_v6 = vsel %vm1010_vm2, %v1377_v40, %v1007_v1  ;;  %v1019_v7 = vmul.f32 %v1381_v3, %v820_v60  ;;  %1382 = vpow2.f32 %v1260_v2  ;;  %vm1024_vm4 = vweird.f32 %v1381_v3 }
 0x555   :  { %v1016_v8 = vsel %vm1013_vm3, %v1015_v4, %v1011_v6  ;;  %1384 = vrcp.f32 %v821_v5  ;;  %vm1025_vm6 = vmor %vm1023_vm5, %vm1024_vm4  ;;  %v1044_v20 = vand.u32 2147483648, %v821_v5  ;;  %v1042_v22 = vand.u32 2147483647, %v821_v5 }
 0x556   :  { %1075 = vst [vmem:[%s1690_s8 + $0x60] sm:$0xff] %v1016_v8  ;;  %v1020_v57 = vsub.f32 1.0, %v1019_v7  ;;  %vm1038_vm9 = vweird.f32 %v821_v5 }
 0x557   :  { %v1045_v25 = vor.u32 1.1754944e-38, %v1044_v20  ;;  %vm1043_vm11 = vcmp.eq.f32.partialorder %v1042_v22, 8.507059e+37 }
 0x558   :  { %v1021_v9 = vmul.f32 %v1381_v3, %v1020_v57 }
 0x55a   :  { %v1383_v11 = vpop.eup %1382  ;;  %v1022_v12 = vadd.f32 %v1381_v3, %v1021_v9 }
 0x55b   :  { %v1385_v13 = vpop.eup %1384  ;;  %v822_v15 = vadd.f32 1.0, %v1383_v11 }
 0x55c   :  { %v1026_v16 = vsel %vm1025_vm6, %v1381_v3, %v1022_v12  ;;  %v1034_v17 = vmul.f32 %v1385_v13, %v821_v5  ;;  %vm1039_vm8 = vweird.f32 %v1385_v13 }
 0x55d   :  { %v1031_v18 = vsel %vm1028_vm7, %v1030_v14, %v1026_v16  ;;  %1386 = vrcp.f32 %v822_v15  ;;  %vm1040_vm10 = vmor %vm1038_vm9, %vm1039_vm8  ;;  %v1059_v31 = vand.u32 2147483648, %v822_v15  ;;  %v1057_v33 = vand.u32 2147483647, %v822_v15 }
 0x55e   :  { %1076 = vst [vmem:[%s1690_s8 + $0x68] sm:$0xff] %v1031_v18  ;;  %v1035_v19 = vsub.f32 1.0, %v1034_v17  ;;  %vm1053_vm13 = vweird.f32 %v822_v15 }
 0x55f   :  { %v1060_v35 = vor.u32 1.1754944e-38, %v1059_v31  ;;  %vm1058_vm15 = vcmp.eq.f32.partialorder %v1057_v33, 8.507059e+37 }
 0x560   :  { %v1036_v21 = vmul.f32 %v1385_v13, %v1035_v19 }
 0x562   :  { %v1037_v23 = vadd.f32 %v1385_v13, %v1036_v21 }
 0x563   :  { %v1387_v24 = vpop.eup %1386 }
 0x564   :  { %v1041_v27 = vsel %vm1040_vm10, %v1385_v13, %v1037_v23  ;;  %v1049_v28 = vmul.f32 %v1387_v24, %v822_v15  ;;  %vm1054_vm12 = vweird.f32 %v1387_v24 }
 0x565   :  { %v1046_v29 = vsel %vm1043_vm11, %v1045_v25, %v1041_v27  ;;  %vm1055_vm14 = vmor %vm1053_vm13, %vm1054_vm12 }
 0x566   :  { %1077 = vst [vmem:[%s1690_s8 + $0x70] sm:$0xff] %v1046_v29  ;;  %v1050_v30 = vsub.f32 1.0, %v1049_v28 }
 0x568   :  { %v1051_v32 = vmul.f32 %v1387_v24, %v1050_v30 }
 0x56a   :  { %v1052_v34 = vadd.f32 %v1387_v24, %v1051_v32 }
 0x56c   :  { %v1056_v36 = vsel %vm1055_vm14, %v1387_v24, %v1052_v34 }
 0x56d   :  { %v1061_v37 = vsel %vm1058_vm15, %v1060_v35, %v1056_v36 }
 0x56e   :  { %1078 = vst [vmem:[%s1690_s8 + $0x78] sm:$0xff] %v1061_v37 }
 0x56f   :  { %1083 = vsyncpa [#allocation3], 1 }
 0x570   :  { %1084 = vsyncpa [#allocation5], 1 }

</bundles_post_ra>
